<compile_context>
chip_gen: v7x
topology: tpu7x:2x2x1
jax: 0.10.0
libtpu: 0.0.40
codegen_flags: <defaults>
</compile_context>

<pallas_src>
import functools
import math

import jax
import jax.numpy as jnp
from jax.experimental import pallas as pl
from jax.experimental.pallas import tpu as pltpu


def _round_up(v, m):
    return ((v + m - 1) // m) * m


def _gconv_kernel(adj_ref, x_ref, w_ref, b_ref, out_ref, acc_ref, *,
                  activation, n_valid_cols):
    """One GraphConvolution layer: out = act(adj @ (x @ W) + b).

    Grid = (row-tiles of adj, reduction tiles over nodes).  adj_ref is the
    (tm, tk) tile, x_ref the (tk, F_in) node slab for this reduction step,
    W/b are fully resident.  acc_ref is an f32 (tm, F_out) accumulator.
    """
    k = pl.program_id(1)

    @pl.when(k == 0)
    def _init():
        acc_ref[...] = jnp.zeros_like(acc_ref)

    # support slab for these nodes: (tk, F_out), accumulated in f32 on the MXU,
    # then cast to bf16 for the second (adj) MXU pass.
    support = jnp.dot(x_ref[...], w_ref[...],
                      preferred_element_type=jnp.float32)
    acc_ref[...] += jnp.dot(adj_ref[...], support.astype(jnp.bfloat16),
                            preferred_element_type=jnp.float32)

    @pl.when(k == pl.num_programs(1) - 1)
    def _finalize():
        # Bias add / activation only once, in the epilogue (f32 on the VPU).
        o = acc_ref[...] + b_ref[...]
        if activation == "relu":
            out_ref[...] = jnp.maximum(o, 0.0).astype(out_ref.dtype)
        else:  # "log_softmax" over the valid (un-padded) class lanes.
            mask = jax.lax.broadcasted_iota(jnp.int32, o.shape, 1) < n_valid_cols
            o = jnp.where(mask, o, -jnp.inf)
            m = jnp.max(o, axis=1, keepdims=True)
            z = o - m
            lse = jnp.log(jnp.sum(jnp.exp(z), axis=1, keepdims=True))
            out_ref[...] = (z - lse).astype(out_ref.dtype)


def _graph_conv(adj_p, x_p, w_p, b_p, *, activation, n_valid_cols, out_dtype,
                tm, tk):
    n_pad = adj_p.shape[0]
    f_in = x_p.shape[1]
    f_out = w_p.shape[1]
    grid = (n_pad // tm, n_pad // tk)

    kernel = functools.partial(_gconv_kernel, activation=activation,
                               n_valid_cols=n_valid_cols)
    return pl.pallas_call(
        kernel,
        out_shape=jax.ShapeDtypeStruct((n_pad, f_out), out_dtype),
        grid_spec=pltpu.PrefetchScalarGridSpec(
            num_scalar_prefetch=0,
            grid=grid,
            in_specs=[
                pl.BlockSpec((tm, tk), lambda i, k: (i, k)),        # adj tile (streamed)
                pl.BlockSpec((tk, f_in), lambda i, k: (k, 0)),      # node-feature slab
                pl.BlockSpec((f_in, f_out), lambda i, k: (0, 0)),   # resident weight
                pl.BlockSpec((1, f_out), lambda i, k: (0, 0)),      # resident bias
            ],
            out_specs=pl.BlockSpec((tm, f_out), lambda i, k: (i, 0)),
            scratch_shapes=[pltpu.VMEM((tm, f_out), jnp.float32)],
        ),
        compiler_params=pltpu.CompilerParams(
            dimension_semantics=("parallel", "arbitrary"),
            vmem_limit_bytes=48 * 1024 * 1024,  # explicit, with headroom on v7x (64 MiB phys)
        ),
    )(adj_p, x_p, w_p, b_p)


def gcn_forward(x, adj, w1, b1, w2, b2, *, tm=128, tk=128):
    """Full GCN forward.  x: [N, F] f32, adj: [N, N] f32 (dense), returns [N, nclass] f32."""
    n, nfeat = x.shape
    nhid = w1.shape[1]
    nclass = w2.shape[1]

    n_pad = _round_up(n, max(tm, tk))
    f_pad = _round_up(nfeat, 128)
    h_pad = _round_up(nhid, 128)
    c_pad = _round_up(nclass, 128)

    bf16 = jnp.bfloat16
    # Zero-pad to lane-dense shapes and cast matmul operands to bf16.
    adj_p = jnp.zeros((n_pad, n_pad), bf16).at[:n, :n].set(adj.astype(bf16))
    x_p = jnp.zeros((n_pad, f_pad), bf16).at[:n, :nfeat].set(x.astype(bf16))
    w1_p = jnp.zeros((f_pad, h_pad), bf16).at[:nfeat, :nhid].set(w1.astype(bf16))
    b1_p = jnp.zeros((1, h_pad), jnp.float32).at[:, :nhid].set(b1.reshape(1, -1))
    w2_p = jnp.zeros((h_pad, c_pad), bf16).at[:nhid, :nclass].set(w2.astype(bf16))
    b2_p = jnp.zeros((1, c_pad), jnp.float32).at[:, :nclass].set(b2.reshape(1, -1))

    # Layer 1: h = relu(adj @ (x @ W1) + b1), kept bf16/lane-dense for layer 2.
    h_p = _graph_conv(adj_p, x_p, w1_p, b1_p, activation="relu",
                      n_valid_cols=nhid, out_dtype=bf16, tm=tm, tk=tk)

    # Dropout: eval mode (training=False) -> identity.
    # TODO(synk): training-mode dropout would use pltpu.prng_seed + pltpu.stateful_bernoulli.

    # Layer 2: log_softmax(adj @ (h @ W2) + b2, axis=1), masked over padded class lanes.
    out_p = _graph_conv(adj_p, h_p, w2_p, b2_p, activation="log_softmax",
                        n_valid_cols=nclass, out_dtype=jnp.float32, tm=tm, tk=tk)

    return out_p[:n, :nclass]


def init_gcn_params(key, nfeat, nhid, nclass):
    """Mimics GraphConvolution.reset_parameters: U(-stdv, stdv), stdv = 1/sqrt(out)."""
    k1, k2, k3, k4 = jax.random.split(key, 4)
    stdv1 = 1.0 / math.sqrt(nhid)
    stdv2 = 1.0 / math.sqrt(nclass)
    w1 = jax.random.uniform(k1, (nfeat, nhid), jnp.float32, -stdv1, stdv1)
    b1 = jax.random.uniform(k2, (1, nhid), jnp.float32, -stdv1, stdv1)
    w2 = jax.random.uniform(k3, (nhid, nclass), jnp.float32, -stdv2, stdv2)
    b2 = jax.random.uniform(k4, (1, nclass), jnp.float32, -stdv2, stdv2)
    return w1, b1, w2, b2


def _ref_forward(x, adj, w1, b1, w2, b2):
    """Pure-JAX reference mirroring the kernel's bf16 quantization points."""
    f32 = jnp.float32
    q = lambda a: a.astype(jnp.bfloat16).astype(f32)
    xq, adjq, w1q, w2q = q(x), q(adj), q(w1), q(w2)
    s1 = q(xq @ w1q)                                   # support cast to bf16 pre adj@
    h = jnp.maximum(adjq @ s1 + b1.reshape(1, -1), 0.0)
    hq = q(h)                                          # layer-1 output stored in bf16
    s2 = q(hq @ w2q)
    o = adjq @ s2 + b2.reshape(1, -1)
    return jax.nn.log_softmax(o, axis=1)


if __name__ == "__main__":
    # Small but tiling-exercising sizes: N=160 -> N_pad=256 -> 2x2 grid with
    # a padded tail row-tile and a 2-step reduction axis.
    N, NFEAT, NHID, NCLASS = 160, 16, 32, 8

    key = jax.random.PRNGKey(0)
    kx, kadj, kparams = jax.random.split(key, 3)

    # Node features.
    x = jax.random.normal(kx, (N, NFEAT), dtype=jnp.float32)

    # Symmetric, row-normalized dense adjacency with self-loops.
    a = (jax.random.uniform(kadj, (N, N)) < 0.2).astype(jnp.float32)
    a = jnp.maximum(a, a.T) + jnp.eye(N, dtype=jnp.float32)
    adj = a / jnp.sum(a, axis=1, keepdims=True)

    w1, b1, w2, b2 = init_gcn_params(kparams, NFEAT, NHID, NCLASS)

    out = gcn_forward(x, adj, w1, b1, w2, b2)
    jax.block_until_ready(out)

    assert out.shape == (N, NCLASS)

    # Sanity 1: log_softmax rows should exp-sum to ~1.
    row_sums = jnp.sum(jnp.exp(out), axis=1)
    assert jnp.allclose(row_sums, 1.0, atol=1e-3), "row sums off"

    # Sanity 2: match a pure-JAX reference with the same bf16 quantization points.
    ref = _ref_forward(x, adj, w1, b1, w2, b2)
    assert jnp.allclose(out, ref, atol=1e-2, rtol=1e-2), (
        f"max abs err {jnp.max(jnp.abs(out - ref))}")

    print("KERNEL_OK")
</pallas_src>

<mosaic_0001>
module attributes {stable_mosaic.version = 11 : i64} {
  func.func @_gconv_kernel(%arg0: i32, %arg1: i32, %arg2: memref<128x128xbf16, #tpu.memory_space<vmem>>, %arg3: memref<128x128xbf16, #tpu.memory_space<vmem>>, %arg4: memref<128x128xbf16, #tpu.memory_space<vmem>>, %arg5: memref<1x128xf32, #tpu.memory_space<vmem>>, %arg6: memref<128x128xbf16, #tpu.memory_space<vmem>>, %arg7: memref<128x128xf32, #tpu.memory_space<vmem>>) attributes {dimension_semantics = [#tpu.dimension_semantics<parallel>, #tpu.dimension_semantics<arbitrary>], iteration_bounds = array<i64: 2, 2>, scalar_prefetch = 0 : i64, scratch_operands = 1 : i64, tpu.core_type = #tpu.core_type<tc>, window_params = [{transform_indices = @transform_0, window_bounds = array<i64: 128, 128>}, {transform_indices = @transform_1, window_bounds = array<i64: 128, 128>}, {pipeline_mode = #tpu.pipeline_mode<synchronous>, transform_indices = @transform_2, window_bounds = array<i64: 128, 128>}, {pipeline_mode = #tpu.pipeline_mode<synchronous>, transform_indices = @transform_3, window_bounds = array<i64: 1, 128>}, {transform_indices = @transform_4, window_bounds = array<i64: 128, 128>}]} {
    %c0_i32 = arith.constant 0 : i32
    %0 = arith.cmpi eq, %arg1, %c0_i32 : i32
    %1 = arith.extui %0 : i1 to i32
    %c0_i32_0 = arith.constant 0 : i32
    %2 = arith.cmpi ne, %1, %c0_i32_0 : i32
    scf.if %2 {
      %cst_12 = arith.constant 0.000000e+00 : f32
      %15 = vector.broadcast %cst_12 : f32 to vector<128x128xf32>
      %c0_13 = arith.constant 0 : index
      %c0_14 = arith.constant 0 : index
      %16 = vector.load %arg7[%c0_13, %c0_14] : memref<128x128xf32, #tpu.memory_space<vmem>>, vector<128x128xf32>
      tpu.vector_store %arg7[%c0_13, %c0_14], %15 {strides = array<i32>} : memref<128x128xf32, #tpu.memory_space<vmem>>, vector<128x128xf32>,
    } else {
    }
    %c0 = arith.constant 0 : index
    %c0_1 = arith.constant 0 : index
    %3 = vector.load %arg3[%c0, %c0_1] : memref<128x128xbf16, #tpu.memory_space<vmem>>, vector<128x128xbf16>
    %c0_2 = arith.constant 0 : index
    %c0_3 = arith.constant 0 : index
    %4 = vector.load %arg4[%c0_2, %c0_3] : memref<128x128xbf16, #tpu.memory_space<vmem>>, vector<128x128xbf16>
    %cst = arith.constant dense<0.000000e+00> : vector<128x128xf32>
    %5 = tpu.matmul %3, %4, %cst {dimension_numbers = #tpu.dot_dimension_numbers<[1], [0], [0], [1], [0, 0, 1, 1], [], []>} : vector<128x128xbf16>, vector<128x128xbf16>, vector<128x128xf32> -> vector<128x128xf32>
    %c0_4 = arith.constant 0 : index
    %c0_5 = arith.constant 0 : index
    %6 = vector.load %arg7[%c0_4, %c0_5] : memref<128x128xf32, #tpu.memory_space<vmem>>, vector<128x128xf32>
    %c0_6 = arith.constant 0 : index
    %c0_7 = arith.constant 0 : index
    %7 = vector.load %arg2[%c0_6, %c0_7] : memref<128x128xbf16, #tpu.memory_space<vmem>>, vector<128x128xbf16>
    %8 = arith.truncf %5 : vector<128x128xf32> to vector<128x128xbf16>
    %cst_8 = arith.constant dense<0.000000e+00> : vector<128x128xf32>
    %9 = tpu.matmul %7, %8, %cst_8 {dimension_numbers = #tpu.dot_dimension_numbers<[1], [0], [0], [1], [0, 0, 1, 1], [], []>} : vector<128x128xbf16>, vector<128x128xbf16>, vector<128x128xf32> -> vector<128x128xf32>
    %10 = arith.addf %6, %9 : vector<128x128xf32>
    %c0_9 = arith.constant 0 : index
    %c0_10 = arith.constant 0 : index
    %11 = vector.load %arg7[%c0_9, %c0_10] : memref<128x128xf32, #tpu.memory_space<vmem>>, vector<128x128xf32>
    tpu.vector_store %arg7[%c0_9, %c0_10], %10 {strides = array<i32>} : memref<128x128xf32, #tpu.memory_space<vmem>>, vector<128x128xf32>,
    %c1_i32 = arith.constant 1 : i32
    %12 = arith.cmpi eq, %arg1, %c1_i32 : i32
    %13 = arith.extui %12 : i1 to i32
    %c0_i32_11 = arith.constant 0 : i32
    %14 = arith.cmpi ne, %13, %c0_i32_11 : i32
    scf.if %14 {
      %c0_12 = arith.constant 0 : index
      %c0_13 = arith.constant 0 : index
      %15 = vector.load %arg7[%c0_12, %c0_13] : memref<128x128xf32, #tpu.memory_space<vmem>>, vector<128x128xf32>
      %c0_14 = arith.constant 0 : index
      %c0_15 = arith.constant 0 : index
      %16 = vector.load %arg5[%c0_14, %c0_15] : memref<1x128xf32, #tpu.memory_space<vmem>>, vector<1x128xf32>
      %17 = vector.broadcast %16 : vector<1x128xf32> to vector<128x128xf32>
      %18 = arith.addf %15, %17 : vector<128x128xf32>
      %cst_16 = arith.constant 0.000000e+00 : f32
      %19 = vector.broadcast %cst_16 : f32 to vector<128x128xf32>
      %20 = arith.maximumf %18, %19 : vector<128x128xf32>
      %21 = arith.truncf %20 : vector<128x128xf32> to vector<128x128xbf16>
      %c0_17 = arith.constant 0 : index
      %c0_18 = arith.constant 0 : index
      %22 = vector.load %arg6[%c0_17, %c0_18] : memref<128x128xbf16, #tpu.memory_space<vmem>>, vector<128x128xbf16>
      tpu.vector_store %arg6[%c0_17, %c0_18], %21 {strides = array<i32>} : memref<128x128xbf16, #tpu.memory_space<vmem>>, vector<128x128xbf16>,
    } else {
    }
    return
  }
  func.func @transform_0(%arg0: i32, %arg1: i32) -> (i32, i32) {
    %c0_i32 = arith.constant 0 : i32
    return %arg0, %arg1 : i32, i32
  }
  func.func @transform_1(%arg0: i32, %arg1: i32) -> (i32, i32) {
    %c0_i32 = arith.constant 0 : i32
    %c0_i32_0 = arith.constant 0 : i32
    return %arg1, %c0_i32 : i32, i32
  }
  func.func @transform_2(%arg0: i32, %arg1: i32) -> (i32, i32) {
    %c0_i32 = arith.constant 0 : i32
    %c0_i32_0 = arith.constant 0 : i32
    %c0_i32_1 = arith.constant 0 : i32
    return %c0_i32, %c0_i32_0 : i32, i32
  }
  func.func @transform_3(%arg0: i32, %arg1: i32) -> (i32, i32) {
    %c0_i32 = arith.constant 0 : i32
    %c0_i32_0 = arith.constant 0 : i32
    %c0_i32_1 = arith.constant 0 : i32
    return %c0_i32, %c0_i32_0 : i32, i32
  }
  func.func @transform_4(%arg0: i32, %arg1: i32) -> (i32, i32) {
    %c0_i32 = arith.constant 0 : i32
    %c0_i32_0 = arith.constant 0 : i32
    return %arg0, %c0_i32 : i32, i32
  }
}

</mosaic_0001>

<bundles_post_ra>
// kernel: tpu_custom_call.1
= control target key start
LH: loop header
LB: loop body
LE: loop exit
PB: predicated region body
PF: predicated region fallthrough
CT: control target
= control target key end

     0   :  { %s2116_s0 = inlined_call_operand.hbm [shape: bf16[256,256], index: 0, kind: input, shape index: {}]   ;;  %s2117_s1 = inlined_call_operand.hbm [shape: bf16[256,128], index: 1, kind: input, shape index: {}]   ;;  %s2118_s2 = inlined_call_operand.hbm [shape: bf16[128,128], index: 2, kind: input, shape index: {}]   ;;  %s2119_s3 = inlined_call_operand.vmem [shape: f32[1,128], index: 3, kind: input, shape index: {}]   ;;  %s2120_s4 = inlined_call_operand.hbm [shape: bf16[256,128], index: 4, kind: output, shape index: {}]  }
   0x1   :  { %2144 = sst [smem:[#allocation23_spill]] %s2118_s2 }
   0x2   :  { %2145 = sst [smem:[#allocation24_spill]] %s2119_s3 }
   0x3   :  { %2146 = sst [smem:[#allocation25_spill]] %s2120_s4 }
   0x4   :  { %9 = vsyncpa [#allocation4], 0 }
   0x5   :  { %11 = vsyncpa [#allocation4 + $0x1], 0 }
   0x6   :  { %12 = vsyncpa [#allocation7], 0 }
   0x7   :  { %14 = vsyncpa [#allocation7 + $0x1], 0 }
   0x8   :  { %15 = vsyncpa [#allocation5], 0 }
   0x9   :  { %17 = vsyncpa [#allocation5 + $0x1], 0  ;;  %s1701_s15 = smov 0   ;;  %s1703_s16 = smov 0  }
   0xa   :  { %s1705_s17 = smov 0   ;;  %s1707_s18 = smov 0  }
   0xb   :  { %s1709_s19 = smov 0   ;;  %s1711_s20 = smov 0  }
   0xc   :  { %s1713_s21 = smov 0   ;;  %s1715_s22 = smov 0  }
   0xd   :  { %s1717_s23 = smov 0   ;;  %s1719_s24 = smov 0  }
   0xe   :  { %s1721_s25 = smov 0   ;;  %s1723_s26 = smov 0  }
   0xf   :  { %s1725_s27 = smov 0   ;;  %s1727_s28 = smov 0  }
  0x10 LB: > { %2147 = sst [smem:[#allocation14_spill]] %s1612_s15  ;;  %s1768_s29 = sadd.s32 4294967295, %s1664_s28   ;;  %s1664_s28 = sphi %s1727_s28, %s23_s28   ;;  %s1660_s27 = sphi %s1725_s27, %s2205_s27   ;;  %s1656_s26 = sphi %s1723_s26, %s2204_s26   ;;  %s1652_s25 = sphi %s1721_s25, %s2203_s25   ;;  %s1648_s24 = sphi %s1719_s24, %s2202_s24   ;;  %s1644_s23 = sphi %s1717_s23, %s2201_s23   ;;  %s1640_s22 = sphi %s1715_s22, %s2200_s22   ;;  %s1636_s21 = sphi %s1713_s21, %s2199_s21   ;;  %s1632_s20 = sphi %s1711_s20, %s2198_s20   ;;  %s1628_s19 = sphi %s1709_s19, %s2197_s19   ;;  %s1624_s18 = sphi %s1707_s18, %s2196_s18   ;;  %s1620_s17 = sphi %s1705_s17, %s2195_s17   ;;  %s1616_s16 = sphi %s1703_s16, %s2194_s16   ;;  %s1612_s15 = sphi %s1701_s15, %s2191_s15  }
  0x11   : > { %2148 = sst [smem:[#allocation15_spill]] %s1616_s16  ;;  %s1024_s30 = sadd.s32 4294967294, %s1664_s28  }
  0x12   : > { %2149 = sst [smem:[#allocation16_spill]] %s1648_s24  ;;  %p57_p0 = scmp.ne.s32.totalorder %s1640_s22, %s1636_s21 }
  0x13   : > { %2150 = sst [smem:[#allocation17_spill]] %s1652_s25  ;;  %p2123_p1 = scmp.eq.s32.totalorder %s1768_s29, 0 }
  0x14   : > { %2151 = sst [smem:[#allocation18_spill]] %s1768_s29  ;;  %p83_p2 = scmp.ne.s32.totalorder %s1628_s19, %s1624_s18 }
  0x15   : > { %p1777_p3 = por %p2123_p1, %p57_p0  ;;  %p148_p4 = scmp.ne.s32.totalorder %s1620_s17, %s1616_s16 }
  0x16   : > { %p1785_p5 = por %p83_p2, %p2123_p1  ;;  %p149_p6 = scmp.eq.s32.totalorder %s1768_s29, 3 }
  0x17   : > { %s2152_s6 = scalar_select %p1777_p3, 1, 0 }
  0x18   : > { %s2153_s7 = scalar_select %p1785_p5, 1, 0 }
  0x19   : > { %p154_p7 = scmp.ne.s32.totalorder %s1616_s16, %s1612_s15  ;;  %p155_p8 = scmp.eq.s32.totalorder %s1024_s30, 3 }
  0x1a   : > { %2154 = sst [smem:[#allocation19_spill]] %s2153_s7  ;;  %p1792_p9 = por %p149_p6, %p148_p4 }
  0x1b   : > { %p1025_p10 = scmp.ge.s32.totalorder %s1664_s28, 1  ;;  %p1797_p11 = por %p155_p8, %p154_p7 }
  0x1c   : > { %s2155_s8 = scalar_select %p1792_p9, 1, 0 }
  0x1d   : > { %s2157_s9 = scalar_select %p1797_p11, 1, 0 }
  0x1e   : > { %2156 = sst [smem:[#allocation20_spill]] %s2155_s8  ;;  %p162_p12 = scmp.lt.s32.totalorder %s1664_s28, 5 }
  0x1f   : > { %2158 = sst [smem:[#allocation21_spill]] %s2157_s9  ;;  %s1666_s11 = smov [#allocation8]  }
  0x20   : > { %p1802_p13 = pnand %p1025_p10, %p162_p12  ;;  %s174_s12 = sshll.u32 %s1666_s11, 4  ;;  %s175_s12 = int_to_ptr.vmem [resolvable:$true] %s174_s12 }
  0x21   : > { %s2161_s2 = sld [smem:[#allocation23_spill]] }
  0x22   : > { %s2159_s10 = scalar_select %p1802_p13, 1, 0 }
  0x23   : > { %p1260_p0 = pneg %p1802_p13 }
  0x25   : > { %p1810_p2 = pnand %p1260_p0, %p2123_p1 }
  0x27   : > { %s1422_s21 = scalar_lea.hbm %s2161_s2, 1024  ;;  %p1424_p6 = pneg %p1810_p2 }
  0x28   : > { %p1423_p4 = scmp.ne.s32.totalorder %s2161_s2, %s1422_s21  ;;  %p1429_p10 = scmp.lt.u32.totalorder %s1422_s21, %s2161_s2 }
  0x2a   : > { %p1425_p7 = pnand %p1424_p6, %p1423_p4 }
  0x2c   : > { %p1426_p8 = pneg %p1425_p7 }
  0x2e   : > { %p1431_p12 = pnand %p1429_p10, %p1426_p8 }
  0x30   : > { %1434 = shalt.err (!%p1431_p12)
}
  0x31   : > { %s1435_s15 = scalar_lea.vmem %s175_s12, 1024  ;;  %p1443_p9 = scmp.lt.s32.totalorder %s175_s12, %s175_s12 }
  0x32   : > { %p1436_p0 = scmp.ne.s32.totalorder %s175_s12, %s1435_s15  ;;  %p1444_p5 = scmp.lt.s32.totalorder %s1435_s15, %s1435_s15 }
  0x34   : > { %p1438_p1 = pnand %p1436_p0, %p1424_p6  ;;  %p1445_p3 = por %p1444_p5, %p1443_p9 }
  0x36   : > { %p1439_p11 = pneg %p1438_p1 }
  0x38   : > { %p1446_p13 = pnand %p1445_p3, %p1439_p11 }
  0x3a   : > { %1449 = shalt.err (!%p1446_p13)
}
  0x3b   : > { %s2128_s5 = smov 64   ;;  %s2130_s9 = smov 4  }
  0x3c   : > { %1263 = dma.hbm_to_vmem [thread:$0]  (!%p1810_p2), %s2161_s2, 1024, %s175_s12, [#allocation7], %s2128_s5, %s2128_s5, %s2130_s9  }
  0x3d   : > { %s32_s18 = sadd.s32 1, %s1656_s26  ;;  %s35_s21 = sadd.s32 1, %s1660_s27 }
  0x3e   : > { %p33_p1 = scmp.ge.s32.totalorder %s32_s18, 2  ;;  %s44_s30 = sadd.s32 1, %s1644_s23 }
  0x3f   : > { %p51_p3 = scmp.ne.s32.totalorder %s1644_s23, %s1640_s22  ;;  %p2143_p5 = scmp.eq.s32.totalorder %s1664_s28, 0 }
  0x40   : > { %s2207_s18 = smov (%p33_p1, %s32_s18), 0  ;;  %s2209_s21 = smov (!%p33_p1, %s35_s21), %s1660_s27 }
  0x41   : > { %2162 = sst [smem:[#allocation22_spill]] %s2207_s18  ;;  %s1843_s13 = ssub.s32 %s1656_s26, %s2207_s18 }
  0x42   : > { %p37_p9 = scmp.ge.s32.totalorder %s2209_s21, 2  ;;  %p68_p11 = scmp.eq.s32.totalorder %s1843_s13, 0 }
  0x43   : > { %p1849_p13 = por %p2143_p5, %p51_p3  ;;  %p2142_p2 = scmp.lt.s32.totalorder %s1664_s28, 4 }
  0x44   : > { %s2211_s21 = smov (%p37_p9, %s2209_s21), 0  ;;  %s191_s11 = sand.u32 1, %s1644_s23  }
  0x45   : > { %s1088_s15 = sshll.u32 %s1660_s27, 5  ;;  %s39_s14 = ssub.s32 %s1660_s27, %s2211_s21 }
  0x46   : > { %s41_s5 = sor.u32 %s1843_s13, %s39_s14  ;;  %p136_p4 = scmp.eq.s32.totalorder %s39_s14, 0 }
  0x47   : > { %p42_p6 = scmp.eq.s32.totalorder %s41_s5, 0  ;;  %s1028_s9 = sshll.u32 %s191_s11, 6 }
  0x48   : > { %s2164_s2 = sadd.s32 1, %s1620_s17  ;;  %s201_s8 = sadd.s32 %s1656_s26, %s1088_s15 }
  0x49   : > { %s1864_s18 = scalar_select %p136_p4, %s1620_s17, %s2164_s2  }
  0x4a   : > { %s1867_s4 = scalar_select %p42_p6, %s1644_s23, %s44_s30  }
  0x4b   : > { %s1031_s25 = sshll.u32 %s201_s8, 6  ;;  %s195_s3 = scalar_lea.vmem [#allocation3], %s1028_s9 }
  0x4c   : > { %s204_s24 = sshll.u32 %s195_s3, 4  ;;  %s1873_s29 = scalar_lea.hbm %s2116_s0, %s1031_s25  ;;  %s1875_s24 = int_to_ptr.vmem [resolvable:$true] %s204_s24 }
  0x4d   : > { %p1881_p7 = pnand %p2142_p2, %p1849_p13  ;;  %s214_s3 = sand.u32 1, %s1664_s28  }
  0x4e   : > { %s1886_s8 = scalar_lea.sflag [#allocation4], %s191_s11  ;;  %s1450_s16 = scalar_lea.hbm %s1873_s29, 1024 }
  0x4f   : > { %p1451_p8 = scmp.ne.s32.totalorder %s1873_s29, %s1450_s16  ;;  %p1452_p10 = pneg %p1881_p7 }
  0x50   : > { %s1455_s5 = scalar_lea.hbm %s2116_s0, 4096  ;;  %p1456_p1 = scmp.lt.u32.totalorder %s1873_s29, %s2116_s0 }
  0x51   : > { %p1453_p12 = pnand %p1452_p10, %p1451_p8  ;;  %p1457_p3 = scmp.lt.u32.totalorder %s1455_s5, %s1450_s16 }
  0x52   : > { %p1459_p13 = scmp.lt.u32.totalorder %s1450_s16, %s1873_s29 }
  0x53   : > { %p1454_p0 = pneg %p1453_p12  ;;  %p1458_p9 = por %p1457_p3, %p1456_p1 }
  0x55   : > { %p1460_p4 = por %p1459_p13, %p1458_p9 }
  0x57   : > { %p1461_p6 = pnand %p1460_p4, %p1454_p0 }
  0x59   : > { %1464 = shalt.err (!%p1461_p6)
}
  0x5a   : > { %s1465_s12 = scalar_lea.vmem %s1875_s24, 1024  ;;  %s1669_s11 = smov [#allocation3]  }
  0x5b   : > { %p1466_p8 = scmp.ne.s32.totalorder %s1875_s24, %s1465_s12  ;;  %s1470_s15 = sshll.u32 %s1669_s11, 4  ;;  %s1471_s15 = int_to_ptr.vmem [resolvable:$false] %s1470_s15 }
  0x5c   : > { %s1472_s14 = scalar_lea.vmem %s1471_s15, 2048  ;;  %p1473_p5 = scmp.lt.s32.totalorder %s1875_s24, %s1471_s15 }
  0x5d   : > { %p1468_p12 = pnand %p1466_p8, %p1452_p10  ;;  %p1474_p1 = scmp.lt.s32.totalorder %s1472_s14, %s1465_s12 }
  0x5f   : > { %p1469_p2 = pneg %p1468_p12  ;;  %p1475_p3 = por %p1474_p1, %p1473_p5 }
  0x61   : > { %p1476_p9 = pnand %p1475_p3, %p1469_p2 }
  0x63   : > { %1479 = shalt.err (!%p1476_p9)
}
  0x64   : > { %s1670_s16 = smov 128   ;;  %s2166_s25 = smov 4  }
  0x65   : > { %s2167_s7 = smov 64   ;;  %s70_s5 = sadd.s32 1, %s1632_s20 }
  0x66   : > { %1267 = dma.hbm_to_vmem [thread:$0]  (!%p1881_p7), %s1873_s29, 1024, %s1875_s24, %s1886_s8, %s1670_s16, %s2167_s7, %s2166_s25  }
  0x67   : > { %p77_p5 = scmp.ne.s32.totalorder %s1632_s20, %s1628_s19  ;;  %p2168_p2 = scmp.eq.s32.totalorder %s1664_s28, 0 }
  0x68   : > { %s1922_s2 = scalar_select %p68_p11, %s1632_s20, %s70_s5  }
  0x69   : > { %p79_p10 = por %p77_p5, %p2168_p2  ;;  %s216_s9 = sand.u32 1, %s1632_s20  }
  0x6a   : > { %s1089_s30 = sshll.u32 %s1656_s26, 10  ;;  %s1032_s12 = sshll.u32 %s216_s9, 6 }
  0x6b   : > { %s1931_s14 = scalar_lea.hbm %s2117_s1, %s1089_s30  ;;  %p2169_p0 = scmp.lt.s32.totalorder %s1664_s28, 4 }
  0x6c   : > { %s218_s29 = scalar_lea.vmem [#allocation6], %s1032_s12  ;;  %s1943_s8 = scalar_lea.sflag [#allocation7], %s214_s3 }
  0x6d   : > { %p1935_p7 = pnand %p2169_p0, %p79_p10  ;;  %s225_s13 = sshll.u32 %s218_s29, 4  ;;  %s1939_s13 = int_to_ptr.vmem [resolvable:$true] %s225_s13 }
  0x6e   : > { %s1480_s16 = scalar_lea.hbm %s1931_s14, 1024  ;;  %s1485_s30 = scalar_lea.hbm %s2117_s1, 2048 }
  0x6f   : > { %p1481_p11 = scmp.ne.s32.totalorder %s1931_s14, %s1480_s16  ;;  %p1482_p13 = pneg %p1935_p7 }
  0x70   : > { %p1486_p8 = scmp.lt.u32.totalorder %s1931_s14, %s2117_s1  ;;  %p1487_p12 = scmp.lt.u32.totalorder %s1485_s30, %s1480_s16 }
  0x71   : > { %p1483_p4 = pnand %p1482_p13, %p1481_p11  ;;  %p1489_p3 = scmp.lt.u32.totalorder %s1480_s16, %s1931_s14 }
  0x72   : > { %p1488_p1 = por %p1487_p12, %p1486_p8 }
  0x73   : > { %p1484_p6 = pneg %p1483_p4 }
  0x74   : > { %p1490_p9 = por %p1489_p3, %p1488_p1 }
  0x76   : > { %p1491_p5 = pnand %p1490_p9, %p1484_p6 }
  0x78   : > { %1494 = shalt.err (!%p1491_p5)
}
  0x79   : > { %s1495_s3 = scalar_lea.vmem %s1939_s13, 1024  ;;  %s1671_s15 = smov [#allocation6]  }
  0x7a   : > { %p1496_p2 = scmp.ne.s32.totalorder %s1939_s13, %s1495_s3  ;;  %s1500_s29 = sshll.u32 %s1671_s15, 4  ;;  %s1501_s29 = int_to_ptr.vmem [resolvable:$false] %s1500_s29 }
  0x7b   : > { %s1502_s5 = scalar_lea.vmem %s1501_s29, 2048  ;;  %p1503_p11 = scmp.lt.s32.totalorder %s1939_s13, %s1501_s29 }
  0x7c   : > { %p1498_p10 = pnand %p1496_p2, %p1482_p13  ;;  %p1504_p4 = scmp.lt.s32.totalorder %s1502_s5, %s1495_s3 }
  0x7e   : > { %p1499_p0 = pneg %p1498_p10  ;;  %p1505_p8 = por %p1504_p4, %p1503_p11 }
  0x80   : > { %p1506_p12 = pnand %p1505_p8, %p1499_p0 }
  0x82   : > { %1509 = shalt.err (!%p1506_p12)
}
  0x83   : > { %1270 = dma.hbm_to_vmem [thread:$0]  (!%p1935_p7), %s1931_s14, 1024, %s1939_s13, %s1943_s8, %s2167_s7, %s2167_s7, %s2166_s25  }
  0x84   : > { %p2171_p13 = scmp.ne.s32.totalorder %s2159_s10, 0 }
  0x85   : > { %s239_s16 = sand.u32 (!%p2171_p13), 1, %s1640_s22   ;;  %p2172_p6 = scmp.ne.s32.totalorder (!%p2171_p13), %s2152_s6, 0 }
  0x86   : > { %237 = sbr.rel (%p2171_p13) target bundleno = 736 (0x2e0), region = 36  ;;  %s1036_s9 = sshll.u32 (!%p2171_p13), %s239_s16, 6 }
  0x87   : > { %s240_s30 = scalar_lea.sflag (!%p2171_p13), [#allocation4], %s239_s16  ;;  %s1977_s11 = scalar_lea.vmem (!%p2171_p13), [#allocation3], %s1036_s9 }
  0x8d   : > { %1595 = dma.done.wait (%p2172_p6), %s240_s30, 1024  }
  0x8e   : > { %1597 = vsyncadd (%p2172_p6), %s240_s30, 4294966272  ;;  %s2173_s24 = sld [smem:[#allocation18_spill]]  ;;  %s2174_s12 = sld [smem:[#allocation19_spill]] }
  0x8f   : > { %s250_s25 = sand.u32 1, %s1628_s19  }
  0x90   : > { %s1037_s7 = sshll.u32 %s250_s25, 6 }
  0x91   : > { %s1985_s14 = scalar_lea.vmem [#allocation6], %s1037_s7 }
  0x94   : > { %s248_s3 = sand.u32 1, %s2173_s24   ;;  %p2175_p7 = scmp.ne.s32.totalorder %s2174_s12, 0 }
  0x95   : > { %s249_s10 = scalar_lea.sflag [#allocation7], %s248_s3 }
  0x96   : > { %1599 = dma.done.wait (%p2175_p7), %s249_s10, 1024  }
  0x97   : > { %1601 = vsyncadd (%p2175_p7), %s249_s10, 4294966272  ;;  %p2176_p1 = scmp.eq.s32.totalorder %s2173_s24, 0 }
  0x99   : > { %1603 = dma.done.wait (%p2176_p1), [#allocation7], 1024   ;;  %p2177_p3 = pmov %p2176_p1 }
  0x9a   : > { %s2178_s6 = sld [smem:[#allocation15_spill]]  ;;  %s2179_s29 = sld [smem:[#allocation16_spill]] }
  0x9b   : > { %1605 = vsyncadd (%p2177_p3), [#allocation7], 4294966272 }
  0xa0   : > { %s283_s13 = sand.u32 1, %s2178_s6   ;;  %p1040_p9 = scmp.ne.s32.totalorder %s2179_s29, 0 }
  0xa1   : > { %s1039_s8 = sshll.u32 %s283_s13, 6  ;;  %v1672_v0 = vmov (!%p1040_p9), 0.0  }
  0xa2   : > { %s1998_s15 = scalar_lea.vmem [#allocation9], %s1039_s8  ;;  %293 = sbr.rel (%p1040_p9) target bundleno = 170 (0xaa), region = 52  ;;  %294 = vst [vmem:[#allocation2] sm:$0xff] (!%p1040_p9), %v1672_v0  ;;  %295 = vst [vmem:[#allocation2 + $0x8] sm:$0xff] (!%p1040_p9), %v1672_v0 }
  0xa3   : > { %296 = vst [vmem:[#allocation2 + $0x10] sm:$0xff] (!%p1040_p9), %v1672_v0  ;;  %297 = vst [vmem:[#allocation2 + $0x18] sm:$0xff] (!%p1040_p9), %v1672_v0 }
  0xa4   : > { %298 = vst [vmem:[#allocation2 + $0x20] sm:$0xff] (!%p1040_p9), %v1672_v0  ;;  %299 = vst [vmem:[#allocation2 + $0x28] sm:$0xff] (!%p1040_p9), %v1672_v0 }
  0xa5   : > { %300 = vst [vmem:[#allocation2 + $0x30] sm:$0xff] (!%p1040_p9), %v1672_v0  ;;  %301 = vst [vmem:[#allocation2 + $0x38] sm:$0xff] (!%p1040_p9), %v1672_v0 }
  0xa6   : > { %302 = vst [vmem:[#allocation2 + $0x40] sm:$0xff] (!%p1040_p9), %v1672_v0  ;;  %303 = vst [vmem:[#allocation2 + $0x48] sm:$0xff] (!%p1040_p9), %v1672_v0 }
  0xa7   : > { %304 = vst [vmem:[#allocation2 + $0x50] sm:$0xff] (!%p1040_p9), %v1672_v0  ;;  %305 = vst [vmem:[#allocation2 + $0x58] sm:$0xff] (!%p1040_p9), %v1672_v0 }
  0xa8   : > { %306 = vst [vmem:[#allocation2 + $0x60] sm:$0xff] (!%p1040_p9), %v1672_v0  ;;  %307 = vst [vmem:[#allocation2 + $0x68] sm:$0xff] (!%p1040_p9), %v1672_v0 }
  0xa9   : > { %308 = vst [vmem:[#allocation2 + $0x70] sm:$0xff] %v1672_v0  ;;  %309 = vst [vmem:[#allocation2 + $0x78] sm:$0xff] %v1672_v0 }
  0xaa PF: > { %v1398_v1 = vld [vmem:[#allocation8] sm:$0xff]   ;;  %v1399_v2 = vld [vmem:[#allocation8 + $0x8] sm:$0xff]   ;;  %v1400_v3 = vld [vmem:[#allocation8 + $0x10] sm:$0xff]   ;;  %s2180_s5 = sld [smem:[#allocation16_spill]] }
  0xab   : > { %1186 = vmatprep.subr.bf16.mxu0 %v1398_v1  ;;  %v1401_v4 = vld [vmem:[#allocation8 + $0x18] sm:$0xff]   ;;  %v1406_v5 = vld [vmem:[%s1985_s14] sm:$0xff]   ;;  %v1403_v7 = vld [vmem:[#allocation8 + $0x28] sm:$0xff]  }
  0xac   : > { %1187 = vmatpush3.bf16.msra.mxu0 %v1398_v1  ;;  %1202 = vmatprep.mubr.bf16.mxu0 %v1406_v5  ;;  %v1402_v6 = vld [vmem:[#allocation8 + $0x20] sm:$0xff]   ;;  %v1404_v8 = vld [vmem:[#allocation8 + $0x30] sm:$0xff]   ;;  %v1405_v9 = vld [vmem:[#allocation8 + $0x38] sm:$0xff]  }
  0xad   : > { %1188 = vmatprep.subr.bf16.mxu0 %v1399_v2  ;;  %v1407_v10 = vld [vmem:[%s1985_s14 + $0x8] sm:$0xff]   ;;  %v1408_v11 = vld [vmem:[%s1985_s14 + $0x10] sm:$0xff]   ;;  %v1409_v12 = vld [vmem:[%s1985_s14 + $0x18] sm:$0xff]  }
  0xae   : > { %v1410_v13 = vld [vmem:[%s1985_s14 + $0x20] sm:$0xff]   ;;  %v1411_v14 = vld [vmem:[%s1985_s14 + $0x28] sm:$0xff]   ;;  %v1412_v15 = vld [vmem:[%s1985_s14 + $0x30] sm:$0xff]  }
  0xaf   : > { %v1413_v16 = vld [vmem:[%s1985_s14 + $0x38] sm:$0xff]   ;;  %v1414_v17 = vld [vmem:[%s1977_s11] sm:$0xff]   ;;  %v1415_v42 = vld [vmem:[%s1977_s11 + $0x8] sm:$0xff]  }
  0xb0   : > { %1189 = vmatpush3.bf16.msra.mxu0 %v1399_v2  ;;  %1234 = vmatprep.mubr.bf16.mxu1 %v1414_v17  ;;  %v1416_v43 = vld [vmem:[%s1977_s11 + $0x10] sm:$0xff]   ;;  %v1417_v44 = vld [vmem:[%s1977_s11 + $0x18] sm:$0xff]   ;;  %v1418_v45 = vld [vmem:[%s1977_s11 + $0x20] sm:$0xff]   ;;  %p1065_p5 = scmp.ne.s32.totalorder %s2180_s5, 1 }
  0xb1   : > { %1190 = vmatprep.subr.bf16.mxu0 %v1400_v3  ;;  %v1419_v46 = vld [vmem:[%s1977_s11 + $0x28] sm:$0xff]   ;;  %v1420_v47 = vld [vmem:[%s1977_s11 + $0x30] sm:$0xff]   ;;  %v1421_v48 = vld [vmem:[%s1977_s11 + $0x38] sm:$0xff]   ;;  %s2181_s30 = sld [smem:[#allocation24_spill]] (!%p1065_p5) }
  0xb2   : > { %v537_v49 = vld [vmem:[#allocation2 + $0x10] sm:$0xff]  ;;  %v535_v50 = vld [vmem:[#allocation2] sm:$0xff]  ;;  %v538_v52 = vld [vmem:[#allocation2 + $0x18] sm:$0xff] }
  0xb3   : > { %v536_v55 = vld [vmem:[#allocation2 + $0x8] sm:$0xff]  ;;  %v541_v61 = vld [vmem:[#allocation2 + $0x30] sm:$0xff]  ;;  %v539_v62 = vld [vmem:[#allocation2 + $0x20] sm:$0xff] }
  0xb4   : > { %1191 = vmatpush3.bf16.msra.mxu0 %v1400_v3  ;;  %v542_v0 = vld [vmem:[#allocation2 + $0x38] sm:$0xff]  ;;  %v540_v3 = vld [vmem:[#allocation2 + $0x28] sm:$0xff] }
  0xb5   : > { %1192 = vmatprep.subr.bf16.mxu0 %v1401_v4 }
  0xb8   : > { %1193 = vmatpush3.bf16.msra.mxu0 %v1401_v4 }
  0xb9   : > { %1194 = vmatprep.subr.bf16.mxu0 %v1402_v6 }
  0xbc   : > { %1195 = vmatpush3.bf16.msra.mxu0 %v1402_v6 }
  0xbd   : > { %1196 = vmatprep.subr.bf16.mxu0 %v1403_v7 }
  0xc0   : > { %1197 = vmatpush3.bf16.msra.mxu0 %v1403_v7 }
  0xc1   : > { %1198 = vmatprep.subr.bf16.mxu0 %v1404_v8 }
  0xc4   : > { %1199 = vmatpush3.bf16.msra.mxu0 %v1404_v8 }
  0xc5   : > { %1200 = vmatprep.subr.bf16.mxu0 %v1405_v9 }
  0xc8   : > { %1201 = vmatpush3.bf16.msra.mxu0 %v1405_v9  ;;  %v545_v9 = vld [vmem:[#allocation2 + $0x50] sm:$0xff] }
  0xcb   : > { %1203 = vmatmul.mubr.bf16.vlgmr.msra.gmra.mrb[0].mxu0 %v1407_v10  ;;  %v543_v10 = vld [vmem:[#allocation2 + $0x40] sm:$0xff] }
  0xcc   : > { %1206 = vmatprep.mubr.bf16.mxu0 %v1408_v11 }
  0xd3   : > { %1207 = vmatmul.mubr.bf16.gmra.mrb[4].mxu0 %v1409_v12  ;;  %v546_v12 = vld [vmem:[#allocation2 + $0x58] sm:$0xff] }
  0xd4   : > { %1210 = vmatprep.mubr.bf16.mxu0 %v1410_v13 }
  0xdb   : > { %1211 = vmatmul.mubr.bf16.gmra.mrb[8].mxu0 %v1411_v14 }
  0xdc   : > { %1214 = vmatprep.mubr.bf16.mxu0 %v1412_v15  ;;  %v544_v15 = vld [vmem:[#allocation2 + $0x48] sm:$0xff] }
  0xe3   : > { %1215 = vmatmul.mubr.bf16.gmra.mrb[12].mxu0 %v1413_v16 }
 0x19e   : > { %v1204_v18 = vpop.f32.mrb[0].mxu0 }
 0x19f   : > { %v472_v19 = vpop.f32.mrb[1].mxu0 }
 0x1a0   : > { %v1205_v20 = vpop.f32.mrb[2].mxu0 }
 0x1a1   : > { %v568_v21 = vpack.c.bf16 %v1205_v20, %v1204_v18  ;;  %v475_v22 = vpop.f32.mrb[3].mxu0 }
 0x1a2   : > { %v567_v23 = vpack.c.bf16 %v475_v22, %v472_v19  ;;  %v547_v22 = vld [vmem:[#allocation2 + $0x60] sm:$0xff] }
 0x1a4   : > { %1218 = vmatprep.subr.bf16.mxu1 %v567_v23 }
 0x1a5   : > { %1219 = vmatpush3.bf16.msra.mxu1 %v567_v23 }
 0x1a6   : > { %v1208_v24 = vpop.f32.mrb[4].mxu0  ;;  %1220 = vmatprep.subr.bf16.mxu1 %v568_v21 }
 0x1a7   : > { %v488_v25 = vpop.f32.mrb[5].mxu0 }
 0x1a8   : > { %v1209_v26 = vpop.f32.mrb[6].mxu0 }
 0x1a9   : > { %v570_v27 = vpack.c.bf16 %v1209_v26, %v1208_v24  ;;  %v491_v28 = vpop.f32.mrb[7].mxu0  ;;  %1221 = vmatpush3.bf16.msra.mxu1 %v568_v21  ;;  %v549_v21 = vld [vmem:[#allocation2 + $0x70] sm:$0xff]  ;;  %v550_v24 = vld [vmem:[#allocation2 + $0x78] sm:$0xff] }
 0x1aa   : > { %v569_v29 = vpack.c.bf16 %v491_v28, %v488_v25 }
 0x1ac   : > { %1222 = vmatprep.subr.bf16.mxu1 %v569_v29 }
 0x1ad   : > { %1223 = vmatpush3.bf16.msra.mxu1 %v569_v29 }
 0x1ae   : > { %v1212_v30 = vpop.f32.mrb[8].mxu0  ;;  %1224 = vmatprep.subr.bf16.mxu1 %v570_v27 }
 0x1af   : > { %v504_v31 = vpop.f32.mrb[9].mxu0 }
 0x1b0   : > { %v1213_v32 = vpop.f32.mrb[10].mxu0 }
 0x1b1   : > { %v572_v33 = vpack.c.bf16 %v1213_v32, %v1212_v30  ;;  %v507_v34 = vpop.f32.mrb[11].mxu0  ;;  %1225 = vmatpush3.bf16.msra.mxu1 %v570_v27  ;;  %v548_v27 = vld [vmem:[#allocation2 + $0x68] sm:$0xff] }
 0x1b2   : > { %v571_v35 = vpack.c.bf16 %v507_v34, %v504_v31 }
 0x1b4   : > { %1226 = vmatprep.subr.bf16.mxu1 %v571_v35 }
 0x1b5   : > { %1227 = vmatpush3.bf16.msra.mxu1 %v571_v35  ;;  %v1066_v35 = vld [vmem:[%s2181_s30] ss:$0 sm:$0xff] (!%p1065_p5) }
 0x1b6   : > { %v1216_v36 = vpop.f32.mrb[12].mxu0  ;;  %1228 = vmatprep.subr.bf16.mxu1 %v572_v33 }
 0x1b7   : > { %v520_v37 = vpop.f32.mrb[13].mxu0 }
 0x1b8   : > { %v1217_v38 = vpop.f32.mrb[14].mxu0 }
 0x1b9   : > { %v574_v39 = vpack.c.bf16 %v1217_v38, %v1216_v36  ;;  %v523_v40 = vpop.f32.mrb[15].mxu0  ;;  %1229 = vmatpush3.bf16.msra.mxu1 %v572_v33 }
 0x1ba   : > { %v573_v41 = vpack.c.bf16 %v523_v40, %v520_v37 }
 0x1bc   : > { %1230 = vmatprep.subr.bf16.mxu1 %v573_v41 }
 0x1bd   : > { %1231 = vmatpush3.bf16.msra.mxu1 %v573_v41 }
 0x1be   : > { %1232 = vmatprep.subr.bf16.mxu1 %v574_v39 }
 0x1c1   : > { %1233 = vmatpush3.bf16.msra.mxu1 %v574_v39 }
 0x1c4   : > { %1235 = vmatmul.mubr.bf16.vlgmr.msra.gmra.mrb[0].mxu1 %v1415_v42 }
 0x1c5   : > { %1238 = vmatprep.mubr.bf16.mxu1 %v1416_v43 }
 0x1cc   : > { %1239 = vmatmul.mubr.bf16.gmra.mrb[4].mxu1 %v1417_v44 }
 0x1cd   : > { %1242 = vmatprep.mubr.bf16.mxu1 %v1418_v45 }
 0x1d4   : > { %1243 = vmatmul.mubr.bf16.gmra.mrb[8].mxu1 %v1419_v46 }
 0x1d5   : > { %1246 = vmatprep.mubr.bf16.mxu1 %v1420_v47 }
 0x1dc   : > { %1247 = vmatmul.mubr.bf16.gmra.mrb[12].mxu1 %v1421_v48 }
 0x297   : > { %v1236_v51 = vpop.f32.mrb[0].mxu1 }
 0x298   : > { %v722_v53 = vadd.f32 %v1236_v51, %v537_v49  ;;  %v657_v54 = vpop.f32.mrb[1].mxu1 }
 0x299   : > { %v720_v56 = vadd.f32 %v657_v54, %v535_v50  ;;  %v1237_v57 = vpop.f32.mrb[2].mxu1 }
 0x29a   : > { %738 = vst [vmem:[#allocation2 + $0x10] sm:$0xff] %v722_v53  ;;  %v723_v58 = vadd.f32 %v1237_v57, %v538_v52  ;;  %v660_v59 = vpop.f32.mrb[3].mxu1 }
 0x29b   : > { %736 = vst [vmem:[#allocation2] sm:$0xff] %v720_v56  ;;  %v721_v60 = vadd.f32 %v660_v59, %v536_v55 }
 0x29c   : > { %739 = vst [vmem:[#allocation2 + $0x18] sm:$0xff] %v723_v58 }
 0x29d   : > { %737 = vst [vmem:[#allocation2 + $0x8] sm:$0xff] %v721_v60 }
 0x29f   : > { %v1240_v63 = vpop.f32.mrb[4].mxu1 }
 0x2a0   : > { %v726_v1 = vadd.f32 %v1240_v63, %v541_v61  ;;  %v673_v2 = vpop.f32.mrb[5].mxu1 }
 0x2a1   : > { %v724_v4 = vadd.f32 %v673_v2, %v539_v62  ;;  %v1241_v5 = vpop.f32.mrb[6].mxu1  ;;  %v758_v38 = vld [vmem:[#allocation2 + $0x10] sm:$0xff] (!%p1065_p5) }
 0x2a2   : > { %742 = vst [vmem:[#allocation2 + $0x30] sm:$0xff] %v726_v1  ;;  %v727_v6 = vadd.f32 %v1241_v5, %v542_v0  ;;  %v676_v7 = vpop.f32.mrb[7].mxu1  ;;  %v756_v33 = vld [vmem:[#allocation2] sm:$0xff] (!%p1065_p5)  ;;  %v781_v41 = vadd.f32 (!%p1065_p5), %v1066_v35, %v758_v38 }
 0x2a3   : > { %740 = vst [vmem:[#allocation2 + $0x20] sm:$0xff] %v724_v4  ;;  %v725_v8 = vadd.f32 %v676_v7, %v540_v3  ;;  %v779_v36 = vadd.f32 (!%p1065_p5), %v1066_v35, %v756_v33  ;;  %v759_v39 = vld [vmem:[#allocation2 + $0x18] sm:$0xff] (!%p1065_p5) }
 0x2a4   : > { %743 = vst [vmem:[#allocation2 + $0x38] sm:$0xff] %v727_v6  ;;  %v757_v34 = vld [vmem:[#allocation2 + $0x8] sm:$0xff] (!%p1065_p5)  ;;  %v782_v42 = vadd.f32 (!%p1065_p5), %v1066_v35, %v759_v39  ;;  %v797_v54 = vmax.f32 (!%p1065_p5), %v781_v41, 0.0 }
 0x2a5   : > { %741 = vst [vmem:[#allocation2 + $0x28] sm:$0xff] %v725_v8  ;;  %v780_v37 = vadd.f32 (!%p1065_p5), %v1066_v35, %v757_v34  ;;  %v795_v47 = vmax.f32 (!%p1065_p5), %v779_v36, 0.0 }
 0x2a6   : > { %v798_v55 = vmax.f32 (!%p1065_p5), %v782_v42, 0.0 }
 0x2a7   : > { %v1244_v11 = vpop.f32.mrb[8].mxu1  ;;  %v796_v48 = vmax.f32 (!%p1065_p5), %v780_v37, 0.0 }
 0x2a8   : > { %v730_v13 = vadd.f32 %v1244_v11, %v545_v9  ;;  %v689_v14 = vpop.f32.mrb[9].mxu1  ;;  %v1115_v1 = vpack.c.bf16 (!%p1065_p5), %v798_v55, %v797_v54 }
 0x2a9   : > { %v728_v16 = vadd.f32 %v689_v14, %v543_v10  ;;  %v1245_v17 = vpop.f32.mrb[10].mxu1  ;;  %v762_v45 = vld [vmem:[#allocation2 + $0x30] sm:$0xff] (!%p1065_p5)  ;;  %v1110_v60 = vpack.c.bf16 (!%p1065_p5), %v796_v48, %v795_v47 }
 0x2aa   : > { %746 = vst [vmem:[#allocation2 + $0x50] sm:$0xff] %v730_v13  ;;  %v731_v18 = vadd.f32 %v1245_v17, %v546_v12  ;;  %v692_v19 = vpop.f32.mrb[11].mxu1  ;;  %v760_v40 = vld [vmem:[#allocation2 + $0x20] sm:$0xff] (!%p1065_p5)  ;;  %v785_v50 = vadd.f32 (!%p1065_p5), %v1066_v35, %v762_v45  ;;  %1147 = vst [vmem:[%s1998_s15 + $0x8] sm:$0xff] (!%p1065_p5), %v1115_v1  }
 0x2ab   : > { %744 = vst [vmem:[#allocation2 + $0x40] sm:$0xff] %v728_v16  ;;  %v729_v20 = vadd.f32 %v692_v19, %v544_v15  ;;  %v783_v44 = vadd.f32 (!%p1065_p5), %v1066_v35, %v760_v40  ;;  %v763_v46 = vld [vmem:[#allocation2 + $0x38] sm:$0xff] (!%p1065_p5)  ;;  %1111 = vst [vmem:[%s1998_s15] sm:$0xff] (!%p1065_p5), %v1110_v60  }
 0x2ac   : > { %747 = vst [vmem:[#allocation2 + $0x58] sm:$0xff] %v731_v18  ;;  %v761_v43 = vld [vmem:[#allocation2 + $0x28] sm:$0xff] (!%p1065_p5)  ;;  %v786_v57 = vadd.f32 (!%p1065_p5), %v1066_v35, %v763_v46  ;;  %v801_v62 = vmax.f32 (!%p1065_p5), %v785_v50, 0.0 }
 0x2ad   : > { %745 = vst [vmem:[#allocation2 + $0x48] sm:$0xff] %v729_v20  ;;  %v784_v49 = vadd.f32 (!%p1065_p5), %v1066_v35, %v761_v43  ;;  %v799_v56 = vmax.f32 (!%p1065_p5), %v783_v44, 0.0 }
 0x2ae   : > { %v802_v2 = vmax.f32 (!%p1065_p5), %v786_v57, 0.0 }
 0x2af   : > { %v1248_v23 = vpop.f32.mrb[12].mxu1  ;;  %755 = sbr.rel (%p1065_p5) target bundleno = 708 (0x2c4), region = 56  ;;  %v800_v61 = vmax.f32 (!%p1065_p5), %v784_v49, 0.0 }
 0x2b0   : > { %v734_v25 = vadd.f32 %v1248_v23, %v549_v21  ;;  %v705_v26 = vpop.f32.mrb[13].mxu1  ;;  %v1125_v11 = vpack.c.bf16 (!%p1065_p5), %v802_v2, %v801_v62 }
 0x2b1   : > { %v732_v28 = vadd.f32 %v705_v26, %v547_v22  ;;  %v1249_v29 = vpop.f32.mrb[14].mxu1  ;;  %v766_v53 = vld [vmem:[#allocation2 + $0x50] sm:$0xff] (!%p1065_p5)  ;;  %v1120_v7 = vpack.c.bf16 (!%p1065_p5), %v800_v61, %v799_v56 }
 0x2b2   : > { %750 = vst [vmem:[#allocation2 + $0x70] sm:$0xff] %v734_v25  ;;  %v735_v30 = vadd.f32 %v1249_v29, %v550_v24  ;;  %v708_v31 = vpop.f32.mrb[15].mxu1  ;;  %v764_v51 = vld [vmem:[#allocation2 + $0x40] sm:$0xff] (!%p1065_p5)  ;;  %v789_v4 = vadd.f32 (!%p1065_p5), %v1066_v35, %v766_v53  ;;  %1149 = vst [vmem:[%s1998_s15 + $0x18] sm:$0xff] (!%p1065_p5), %v1125_v11  }
 0x2b3   : > { %748 = vst [vmem:[#allocation2 + $0x60] sm:$0xff] %v732_v28  ;;  %v733_v32 = vadd.f32 %v708_v31, %v548_v27  ;;  %v767_v58 = vld [vmem:[#allocation2 + $0x58] sm:$0xff] (!%p1065_p5)  ;;  %v787_v63 = vadd.f32 (!%p1065_p5), %v1066_v35, %v764_v51  ;;  %1148 = vst [vmem:[%s1998_s15 + $0x10] sm:$0xff] (!%p1065_p5), %v1120_v7  }
 0x2b4   : > { %751 = vst [vmem:[#allocation2 + $0x78] sm:$0xff] %v735_v30  ;;  %v765_v52 = vld [vmem:[#allocation2 + $0x48] sm:$0xff] (!%p1065_p5)  ;;  %v790_v9 = vadd.f32 (!%p1065_p5), %v1066_v35, %v767_v58  ;;  %v805_v13 = vmax.f32 (!%p1065_p5), %v789_v4, 0.0 }
 0x2b5   : > { %749 = vst [vmem:[#allocation2 + $0x68] sm:$0xff] %v733_v32  ;;  %v788_v3 = vadd.f32 (!%p1065_p5), %v1066_v35, %v765_v52  ;;  %v803_v8 = vmax.f32 (!%p1065_p5), %v787_v63, 0.0 }
 0x2b6   : > { %v806_v15 = vmax.f32 %v790_v9, 0.0 }
 0x2b7   : > { %v804_v12 = vmax.f32 %v788_v3, 0.0 }
 0x2b8   : > { %v1135_v21 = vpack.c.bf16 %v806_v15, %v805_v13 }
 0x2b9   : > { %v770_v5 = vld [vmem:[#allocation2 + $0x70] sm:$0xff]  ;;  %v1130_v19 = vpack.c.bf16 %v804_v12, %v803_v8 }
 0x2ba   : > { %v768_v59 = vld [vmem:[#allocation2 + $0x60] sm:$0xff]  ;;  %v793_v17 = vadd.f32 %v1066_v35, %v770_v5  ;;  %1151 = vst [vmem:[%s1998_s15 + $0x28] sm:$0xff] %v1135_v21  }
 0x2bb   : > { %v771_v6 = vld [vmem:[#allocation2 + $0x78] sm:$0xff]  ;;  %v791_v10 = vadd.f32 %v1066_v35, %v768_v59  ;;  %1150 = vst [vmem:[%s1998_s15 + $0x20] sm:$0xff] %v1130_v19  }
 0x2bc   : > { %v769_v0 = vld [vmem:[#allocation2 + $0x68] sm:$0xff]  ;;  %v794_v18 = vadd.f32 %v1066_v35, %v771_v6  ;;  %v809_v22 = vmax.f32 %v793_v17, 0.0 }
 0x2bd   : > { %v792_v14 = vadd.f32 %v1066_v35, %v769_v0  ;;  %v807_v16 = vmax.f32 %v791_v10, 0.0 }
 0x2be   : > { %v810_v23 = vmax.f32 %v794_v18, 0.0 }
 0x2bf   : > { %v808_v20 = vmax.f32 %v792_v14, 0.0 }
 0x2c0   : > { %v1145_v25 = vpack.c.bf16 %v810_v23, %v809_v22 }
 0x2c1   : > { %v1140_v24 = vpack.c.bf16 %v808_v20, %v807_v16 }
 0x2c2   : > { %1153 = vst [vmem:[%s1998_s15 + $0x38] sm:$0xff] %v1145_v25  }
 0x2c3   : > { %1152 = vst [vmem:[%s1998_s15 + $0x30] sm:$0xff] %v1140_v24  }
 0x2c4 PF: > { %s2182_s11 = sld [smem:[#allocation17_spill]]  ;;  %s2184_s12 = sld [smem:[#allocation20_spill]] }
 0x2c5   : > { %s2185_s10 = sld [smem:[#allocation25_spill]]  ;;  %s905_s6 = sshll.u32 %s1998_s15, 4  ;;  %s2036_s6 = int_to_ptr.vmem [resolvable:$true] %s905_s6 }
 0x2c6   : > { %s2040_s8 = scalar_lea.sflag [#allocation5], %s283_s13  ;;  %s1510_s29 = scalar_lea.vmem %s2036_s6, 1024 }
 0x2c7   : > { %p1511_p2 = scmp.ne.s32.totalorder %s2036_s6, %s1510_s29  ;;  %s1673_s5 = smov [#allocation9]  }
 0x2c8   : > { %s1514_s16 = sshll.u32 %s1673_s5, 4  ;;  %s1515_s16 = int_to_ptr.vmem [resolvable:$false] %s1514_s16 }
 0x2c9   : > { %s1516_s9 = scalar_lea.vmem %s1515_s16, 2048  ;;  %p1517_p4 = scmp.lt.s32.totalorder %s2036_s6, %s1515_s16 }
 0x2ca   : > { %s1106_s3 = sshll.u32 %s2182_s11, 10  ;;  %p2186_p10 = scmp.ne.s32.totalorder %s2184_s12, 0 }
 0x2cb   : > { %s2033_s14 = scalar_lea.hbm %s2185_s10, %s1106_s3  ;;  %p1518_p8 = scmp.lt.s32.totalorder %s1516_s9, %s1510_s29 }
 0x2cc   : > { %p1512_p0 = pnand %p1511_p2, %p2186_p10 }
 0x2cd   : > { %p1519_p12 = por %p1518_p8, %p1517_p4 }
 0x2ce   : > { %p1513_p11 = pneg %p1512_p0 }
 0x2d0   : > { %p1520_p13 = pnand %p1519_p12, %p1513_p11 }
 0x2d2   : > { %1523 = shalt.err (!%p1520_p13)
}
 0x2d3   : > { %s1524_s13 = scalar_lea.hbm %s2033_s14, 1024  ;;  %s1528_s11 = scalar_lea.hbm %s2185_s10, 2048 }
 0x2d4   : > { %p1525_p6 = scmp.ne.s32.totalorder %s2033_s14, %s1524_s13  ;;  %p1529_p3 = scmp.lt.u32.totalorder %s2033_s14, %s2185_s10 }
 0x2d5   : > { %p1530_p9 = scmp.lt.u32.totalorder %s1528_s11, %s1524_s13  ;;  %p1532_p2 = scmp.lt.u32.totalorder %s1524_s13, %s2033_s14 }
 0x2d6   : > { %p1526_p7 = pnand %p1525_p6, %p2186_p10 }
 0x2d7   : > { %p1531_p5 = por %p1530_p9, %p1529_p3 }
 0x2d8   : > { %p1527_p1 = pneg %p1526_p7 }
 0x2d9   : > { %p1533_p0 = por %p1532_p2, %p1531_p5 }
 0x2db   : > { %p1534_p11 = pnand %p1533_p0, %p1527_p1 }
 0x2dd   : > { %1537 = shalt.err (!%p1534_p11)
}
 0x2de   : > { %s1674_s25 = smov 64   ;;  %s1675_s7 = smov 4  }
 0x2df   : > { %1258 = dma.vmem_to_hbm [thread:$0]  (%p2186_p10), %s2036_s6, 1024, %s2033_s14, %s2040_s8, %s1674_s25, %s1674_s25, %s1675_s7  }
 0x2e0 PF: > { %s2187_s29 = sld [smem:[#allocation14_spill]]  ;;  %s2188_s5 = sld [smem:[#allocation21_spill]] }
 0x2e1   : > { %p1278_p4 = scmp.ge.s32.totalorder %s1664_s28, 2 }
 0x2e6   : > { %s920_s16 = sand.u32 1, %s2187_s29   ;;  %p2189_p8 = scmp.ne.s32.totalorder %s2188_s5, 0 }
 0x2e7   : > { %s921_s9 = scalar_lea.sflag [#allocation5], %s920_s16 }
 0x2e8   : > { %p1272_p12 = pnand %p1278_p4, %p2189_p8 }
 0x2ea   : > { %1607 = dma.done.wait (!%p1272_p12), %s921_s9, 1024  }
 0x2eb   : > { %1609 = vsyncadd (!%p1272_p12), %s921_s9, 4294966272  ;;  %s23_s28 = sadd.s32 1, %s1664_s28   ;;  %s2191_s15 = sld [smem:[#allocation15_spill]] }
 0x2ec   : > { %p2069_p13 = scmp.ge.s32.totalorder %s23_s28, 6   ;;  %s2192_s12 = sld [smem:[#allocation22_spill]] }
 0x2ed   : > { %s2193_s14 = smov %s2211_s21  ;;  %s2194_s16 = smov %s1620_s17 }
 0x2ee   : > { %s2195_s17 = smov %s1864_s18  ;;  %s2196_s18 = smov %s1628_s19 }
 0x2ef   : > { %s2197_s19 = smov %s1632_s20  ;;  %s2198_s20 = smov %s1922_s2 }
 0x2f0   : > { %s2199_s21 = smov %s1640_s22  ;;  %s2200_s22 = smov %s1644_s23 }
 0x2f1   : > { %s2201_s23 = smov %s1867_s4  ;;  %s2202_s24 = smov %s1656_s26 }
 0x2f2   : > { %s2203_s25 = smov %s1660_s27  ;;  %s2204_s26 = smov %s2192_s12 }
 0x2f3   : > { %s2205_s27 = smov %s2193_s14  ;;  %22 = sbr.rel (!%p2069_p13) target bundleno = 16 (0x10), region = 106 }
 0x2fa   :  { %926 = vsyncpa [#allocation4], 1 }
 0x2fb   :  { %928 = vsyncpa [#allocation4 + $0x1], 1 }
 0x2fc   :  { %929 = vsyncpa [#allocation7], 1 }
 0x2fd   :  { %931 = vsyncpa [#allocation7 + $0x1], 1 }
 0x2fe   :  { %932 = vsyncpa [#allocation5], 1 }
 0x2ff   :  { %934 = vsyncpa [#allocation5 + $0x1], 1 }

</bundles_post_ra>
